<compile_context>
chip_gen: v7x
topology: tpu7x:2x2x1
jax: 0.10.0
libtpu: 0.0.40
codegen_flags: <defaults>
</compile_context>

<pallas_src>
import numpy as np
import jax
import jax.numpy as jnp
from jax.experimental import pallas as pl
from jax.experimental.pallas import tpu as pltpu


# ----------------------------- host-side operator construction (float64) ---

def _circulant(c):
    c = np.asarray(c, dtype=np.float64)
    n = c.shape[0]
    idx = (np.arange(n)[:, None] - np.arange(n)[None, :]) % n
    return c[idx]


def build_H(local_dictionary, input_size):
    """H = concat_k circulant([h_k, 0...0]) along axis=1 -> (N, K*N)."""
    kernels, kernel_size = local_dictionary.shape
    blocks = []
    for k in range(kernels):
        filt = np.concatenate(
            [np.asarray(local_dictionary[k], dtype=np.float64),
             np.zeros(input_size - kernel_size, dtype=np.float64)])
        blocks.append(_circulant(filt))
    return np.concatenate(blocks, axis=1)


def build_conv_transpose_matrix(local_dictionary, input_size, pad):
    """Ht @ v == flatten(conv_transpose1d(v, D, padding=pad)), shape (K*N, N)."""
    kernels, kernel_size = local_dictionary.shape
    N = input_size
    Ht = np.zeros((kernels * N, N), dtype=np.float64)
    for k in range(kernels):
        for j in range(N):
            for m in range(kernel_size):
                i = j + pad - m
                if 0 <= i < N:
                    Ht[k * N + j, i] += float(local_dictionary[k, m])
    return Ht


def _round_up(x, m):
    return (x + m - 1) // m * m


def _cdiv(a, b):
    return -(-a // b)


# ----------------------------- Pallas kernel --------------------------------

def make_crsae_forward(local_dictionary, T, lam, input_size, use_bf16=False):
    kernels, kernel_size = local_dictionary.shape
    N = input_size
    KN = kernels * N
    pad = kernel_size // 2

    # float64 host precompute of the fused per-step operator:
    #   x -> softshrink(x @ A^T + b), A = I - (1/L) Ht H, b = (1/L) Ht y.
    H = build_H(local_dictionary, N)                               # (N, KN)
    L = float(np.max(np.linalg.eigvalsh(H.T @ H))) + 1.0
    Ht = build_conv_transpose_matrix(local_dictionary, N, pad)     # (KN, N)
    A = np.eye(KN, dtype=np.float64) - (1.0 / L) * (Ht @ H)        # (KN, KN)
    BtT = (1.0 / L) * Ht.T                                         # (N, KN)
    thresh = float(lam / L)

    # Zero-pad to lane/MXU-friendly shapes (padded rows/cols stay exactly zero
    # through the whole iteration, so results are unchanged).
    KN_pad = _round_up(KN, 128)
    N_pad = _round_up(N, 128)
    AT_pad = np.zeros((KN_pad, KN_pad), np.float64)
    AT_pad[:KN, :KN] = A.T
    BtT_pad = np.zeros((N_pad, KN_pad), np.float64)
    BtT_pad[:N, :KN] = BtT

    mat_dtype = jnp.bfloat16 if use_bf16 else jnp.float32
    AT_j = jnp.asarray(AT_pad, mat_dtype)
    BtT_j = jnp.asarray(BtT_pad, mat_dtype)

    # coeff == -1 exactly (prev_s is never updated in the reference), so only
    # the x_{t-2} parity chain reaches the output: (T-1)//2 matmuls total.
    n_mm = max(0, (T - 1) // 2)

    def _shrink(c):
        # Softshrink(lam / L): c - clip(c, -t, t)  (2 VPU ops)
        return c - jnp.clip(c, -thresh, thresh)

    def kernel(AT_ref, BtT_ref, yT_ref, xT_ref):
        if T == 0:
            xT_ref[...] = jnp.zeros(xT_ref.shape, xT_ref.dtype)
            return
        y = yT_ref[...]
        if use_bf16:
            y = y.astype(jnp.bfloat16)
        # b = (1/L) * (Ht @ y) in transposed layout, computed once per tile.
        b = jnp.dot(y, BtT_ref[...], preferred_element_type=jnp.float32)
        z = _shrink(b)                       # iteration 0: w == 0  =>  c == b
        for _ in range(n_mm):                # static unroll, (T-1)//2 matmuls
            lhs = z.astype(jnp.bfloat16) if use_bf16 else z
            c = jnp.dot(lhs, AT_ref[...],
                        preferred_element_type=jnp.float32) + b
            z = _shrink(c)
        xT_ref[...] = z

    state = {"single_buffer_ok": True}

    def _run(yT, TM, n_tiles, vmem_limit):
        def build(single_buffer):
            if single_buffer:
                # Grid-invariant operands: double-buffering only wastes VMEM.
                def const_spec(shp):
                    return pl.BlockSpec(shp, lambda i: (0, 0),
                                        pipeline_mode=pl.Buffered(1))
            else:
                def const_spec(shp):
                    return pl.BlockSpec(shp, lambda i: (0, 0))
            return pl.pallas_call(
                kernel,
                out_shape=jax.ShapeDtypeStruct((TM * n_tiles, KN_pad),
                                               jnp.float32),
                grid=(n_tiles,),
                in_specs=[
                    const_spec((KN_pad, KN_pad)),                # A^T, resident
                    const_spec((N_pad, KN_pad)),                 # (1/L) Ht^T
                    pl.BlockSpec((TM, N_pad), lambda i: (i, 0)),  # y tile
                ],
                out_specs=pl.BlockSpec((TM, KN_pad), lambda i: (i, 0)),
                compiler_params=pltpu.CompilerParams(
                    dimension_semantics=("parallel",),
                    vmem_limit_bytes=vmem_limit),
            )

        if state["single_buffer_ok"]:
            try:
                return build(True)(AT_j, BtT_j, yT)
            except Exception:
                # pipeline_mode not accepted on a top-level BlockSpec in this
                # JAX build -> fall back to default double buffering.
                state["single_buffer_ok"] = False
        return build(False)(AT_j, BtT_j, yT)

    def _choose_tiles(M):
        # Bound per-tile zero padding to < one sublane group, and give the M
        # grid >= 2 steps (so "parallel" can use both v7x TensorCores) once M
        # is large enough that the extra padding is noise.
        n_tiles = _cdiv(M, 256)
        if n_tiles == 1 and M >= 16:
            n_tiles = 2
        TM = _round_up(_cdiv(M, n_tiles), 8)
        return TM, n_tiles

    def forward_mn(signal_mn):
        """Native layout: signal (M, N) -> code (M, KN).

        Prefer this entry point when the consumer can take (M, KN): it avoids
        the two extra HBM transpose round trips of the reference layout.
        """
        M = signal_mn.shape[0]
        TM, n_tiles = _choose_tiles(M)
        M_pad = TM * n_tiles

        yT = jnp.zeros((M_pad, N_pad), jnp.float32)
        yT = yT.at[:M, :N].set(signal_mn.astype(jnp.float32))

        mat_bytes = 2 if use_bf16 else 4
        footprint = (
            2 * KN_pad * KN_pad * mat_bytes    # A^T (worst case: double buffer)
            + 2 * N_pad * KN_pad * mat_bytes   # (1/L) Ht^T
            + 2 * TM * N_pad * 4               # y tile (double buffered)
            + 2 * TM * KN_pad * 4              # out tile (double buffered)
            + 6 * TM * KN_pad * 4)             # live f32 temporaries (b, z, c)
        vmem_limit = int(min(64 * 1024 * 1024,
                             max(footprint * 5 // 4, 16 * 1024 * 1024)))

        xT_pad = _run(yT, TM, n_tiles, vmem_limit)
        return xT_pad[:M, :KN]

    def forward(signal):
        """Reference layout: signal (N, M) -> code x (KN, M), float32."""
        return forward_mn(signal.T).T

    return forward, forward_mn, (H, Ht, L)


# ----------------------------- reference (plain numpy, float64) ------------

def ref_forward(H, Ht, y, T, lam, L):
    x = np.zeros((H.shape[1], y.shape[1]), dtype=np.float64)
    prev_x = np.zeros_like(x)
    s = 0.0
    prev_s = 0.0
    for _ in range(T):
        s = (1 + (1 + 4 * prev_s ** 2) ** 0.5) / 2
        w = x + (prev_s - 1) / s * (x - prev_x)
        v = y - H @ w
        c = w + (1.0 / L) * (Ht @ v)
        prev_x = x
        x = np.sign(c) * np.maximum(np.abs(c) - lam / L, 0.0)
    return x


# ----------------------------- main -----------------------------------------

if __name__ == "__main__":
    # Module hyper-parameters (small, consistent with the forward pass)
    T = 5
    lam = 0.1
    input_size = 16
    kernel_size = 3
    kernels = 4
    M = 2                                # number of signal columns
    code_size = (kernels * input_size, M)

    key = jax.random.PRNGKey(0)
    k_dict, k_sig = jax.random.split(key)

    # nn.Parameter(torch.randn(kernels, kernel_size)) -> deterministic normal init
    local_dictionary = np.asarray(
        jax.random.normal(k_dict, (kernels, kernel_size), dtype=jnp.float32),
        dtype=np.float64)

    signal = jax.random.normal(k_sig, (input_size, M), dtype=jnp.float32)

    forward, forward_mn, (H, Ht, L) = make_crsae_forward(
        local_dictionary, T, lam, input_size, use_bf16=False)
    x = jax.block_until_ready(forward(signal))

    x_ref = ref_forward(H, Ht, np.asarray(signal, np.float64), T, lam, L)

    assert x.shape == code_size, (x.shape, code_size)
    assert np.allclose(np.asarray(x), x_ref, atol=1e-3, rtol=1e-3)
    print("KERNEL_OK")
</pallas_src>

<mosaic_0001>
module attributes {stable_mosaic.version = 11 : i64} {
  func.func @kernel(%arg0: i32, %arg1: memref<128x128xf32, #tpu.memory_space<vmem>>, %arg2: memref<128x128xf32, #tpu.memory_space<vmem>>, %arg3: memref<8x128xf32, #tpu.memory_space<vmem>>, %arg4: memref<8x128xf32, #tpu.memory_space<vmem>>) attributes {dimension_semantics = [#tpu.dimension_semantics<parallel>], iteration_bounds = array<i64: 1>, scalar_prefetch = 0 : i64, scratch_operands = 0 : i64, tpu.core_type = #tpu.core_type<tc>, window_params = [{pipeline_mode = #tpu.pipeline_mode<synchronous>, transform_indices = @transform_0, window_bounds = array<i64: 128, 128>}, {pipeline_mode = #tpu.pipeline_mode<synchronous>, transform_indices = @transform_1, window_bounds = array<i64: 128, 128>}, {transform_indices = @transform_2, window_bounds = array<i64: 8, 128>}, {transform_indices = @transform_3, window_bounds = array<i64: 8, 128>}]} {
    %c0 = arith.constant 0 : index
    %c0_0 = arith.constant 0 : index
    %0 = vector.load %arg3[%c0, %c0_0] : memref<8x128xf32, #tpu.memory_space<vmem>>, vector<8x128xf32>
    %c0_1 = arith.constant 0 : index
    %c0_2 = arith.constant 0 : index
    %1 = vector.load %arg2[%c0_1, %c0_2] : memref<128x128xf32, #tpu.memory_space<vmem>>, vector<128x128xf32>
    %cst = arith.constant dense<0.000000e+00> : vector<8x128xf32>
    %2 = tpu.matmul %0, %1, %cst {dimension_numbers = #tpu.dot_dimension_numbers<[1], [0], [0], [1], [0, 0, 1, 1], [], []>} : vector<8x128xf32>, vector<128x128xf32>, vector<8x128xf32> -> vector<8x128xf32>
    %cst_3 = arith.constant -0.00608250778 : f32
    %cst_4 = arith.constant 0.00608250778 : f32
    %3 = vector.broadcast %cst_3 : f32 to vector<8x128xf32>
    %4 = arith.maximumf %3, %2 : vector<8x128xf32>
    %5 = vector.broadcast %cst_4 : f32 to vector<8x128xf32>
    %6 = arith.minimumf %5, %4 : vector<8x128xf32>
    %7 = arith.subf %2, %6 : vector<8x128xf32>
    %c0_5 = arith.constant 0 : index
    %c0_6 = arith.constant 0 : index
    %8 = vector.load %arg1[%c0_5, %c0_6] : memref<128x128xf32, #tpu.memory_space<vmem>>, vector<128x128xf32>
    %cst_7 = arith.constant dense<0.000000e+00> : vector<8x128xf32>
    %9 = tpu.matmul %7, %8, %cst_7 {dimension_numbers = #tpu.dot_dimension_numbers<[1], [0], [0], [1], [0, 0, 1, 1], [], []>} : vector<8x128xf32>, vector<128x128xf32>, vector<8x128xf32> -> vector<8x128xf32>
    %10 = arith.addf %9, %2 : vector<8x128xf32>
    %cst_8 = arith.constant -0.00608250778 : f32
    %cst_9 = arith.constant 0.00608250778 : f32
    %11 = vector.broadcast %cst_8 : f32 to vector<8x128xf32>
    %12 = arith.maximumf %11, %10 : vector<8x128xf32>
    %13 = vector.broadcast %cst_9 : f32 to vector<8x128xf32>
    %14 = arith.minimumf %13, %12 : vector<8x128xf32>
    %15 = arith.subf %10, %14 : vector<8x128xf32>
    %c0_10 = arith.constant 0 : index
    %c0_11 = arith.constant 0 : index
    %16 = vector.load %arg1[%c0_10, %c0_11] : memref<128x128xf32, #tpu.memory_space<vmem>>, vector<128x128xf32>
    %cst_12 = arith.constant dense<0.000000e+00> : vector<8x128xf32>
    %17 = tpu.matmul %15, %16, %cst_12 {dimension_numbers = #tpu.dot_dimension_numbers<[1], [0], [0], [1], [0, 0, 1, 1], [], []>} : vector<8x128xf32>, vector<128x128xf32>, vector<8x128xf32> -> vector<8x128xf32>
    %18 = arith.addf %17, %2 : vector<8x128xf32>
    %cst_13 = arith.constant -0.00608250778 : f32
    %cst_14 = arith.constant 0.00608250778 : f32
    %19 = vector.broadcast %cst_13 : f32 to vector<8x128xf32>
    %20 = arith.maximumf %19, %18 : vector<8x128xf32>
    %21 = vector.broadcast %cst_14 : f32 to vector<8x128xf32>
    %22 = arith.minimumf %21, %20 : vector<8x128xf32>
    %23 = arith.subf %18, %22 : vector<8x128xf32>
    %c0_15 = arith.constant 0 : index
    %c0_16 = arith.constant 0 : index
    %24 = vector.load %arg4[%c0_15, %c0_16] : memref<8x128xf32, #tpu.memory_space<vmem>>, vector<8x128xf32>
    tpu.vector_store %arg4[%c0_15, %c0_16], %23 {strides = array<i32>} : memref<8x128xf32, #tpu.memory_space<vmem>>, vector<8x128xf32>,
    return
  }
  func.func @transform_0(%arg0: i32) -> (i32, i32) {
    %c0_i32 = arith.constant 0 : i32
    %c0_i32_0 = arith.constant 0 : i32
    %c0_i32_1 = arith.constant 0 : i32
    return %c0_i32, %c0_i32_0 : i32, i32
  }
  func.func @transform_1(%arg0: i32) -> (i32, i32) {
    %c0_i32 = arith.constant 0 : i32
    %c0_i32_0 = arith.constant 0 : i32
    %c0_i32_1 = arith.constant 0 : i32
    return %c0_i32, %c0_i32_0 : i32, i32
  }
  func.func @transform_2(%arg0: i32) -> (i32, i32) {
    %c0_i32 = arith.constant 0 : i32
    %c0_i32_0 = arith.constant 0 : i32
    return %arg0, %c0_i32 : i32, i32
  }
  func.func @transform_3(%arg0: i32) -> (i32, i32) {
    %c0_i32 = arith.constant 0 : i32
    %c0_i32_0 = arith.constant 0 : i32
    return %arg0, %c0_i32 : i32, i32
  }
}

module attributes {stable_mosaic.version = 11 : i64} {
  func.func @kernel(%arg0: i32, %arg1: memref<128x128xf32, #tpu.memory_space<vmem>>, %arg2: memref<128x128xf32, #tpu.memory_space<vmem>>, %arg3: memref<8x128xf32, #tpu.memory_space<vmem>>, %arg4: memref<8x128xf32, #tpu.memory_space<vmem>>) attributes {dimension_semantics = [#tpu.dimension_semantics<parallel>], iteration_bounds = array<i64: 1>, scalar_prefetch = 0 : i64, scratch_operands = 0 : i64, tpu.core_type = #tpu.core_type<tc>, window_params = [{pipeline_mode = #tpu.pipeline_mode<synchronous>, transform_indices = @transform_0, window_bounds = array<i64: 128, 128>}, {pipeline_mode = #tpu.pipeline_mode<synchronous>, transform_indices = @transform_1, window_bounds = array<i64: 128, 128>}, {transform_indices = @transform_2, window_bounds = array<i64: 8, 128>}, {transform_indices = @transform_3, window_bounds = array<i64: 8, 128>}]} {
    %c0 = arith.constant 0 : index
    %c0_0 = arith.constant 0 : index
    %0 = vector.load %arg3[%c0, %c0_0] : memref<8x128xf32, #tpu.memory_space<vmem>>, vector<8x128xf32>
    %c0_1 = arith.constant 0 : index
    %c0_2 = arith.constant 0 : index
    %1 = vector.load %arg2[%c0_1, %c0_2] : memref<128x128xf32, #tpu.memory_space<vmem>>, vector<128x128xf32>
    %cst = arith.constant dense<0.000000e+00> : vector<8x128xf32>
    %2 = tpu.matmul %0, %1, %cst {dimension_numbers = #tpu.dot_dimension_numbers<[1], [0], [0], [1], [0, 0, 1, 1], [], []>} : vector<8x128xf32>, vector<128x128xf32>, vector<8x128xf32> -> vector<8x128xf32>
    %cst_3 = arith.constant -0.00608250778 : f32
    %cst_4 = arith.constant 0.00608250778 : f32
    %3 = vector.broadcast %cst_3 : f32 to vector<8x128xf32>
    %4 = arith.maximumf %3, %2 : vector<8x128xf32>
    %5 = vector.broadcast %cst_4 : f32 to vector<8x128xf32>
    %6 = arith.minimumf %5, %4 : vector<8x128xf32>
    %7 = arith.subf %2, %6 : vector<8x128xf32>
    %c0_5 = arith.constant 0 : index
    %c0_6 = arith.constant 0 : index
    %8 = vector.load %arg1[%c0_5, %c0_6] : memref<128x128xf32, #tpu.memory_space<vmem>>, vector<128x128xf32>
    %cst_7 = arith.constant dense<0.000000e+00> : vector<8x128xf32>
    %9 = tpu.matmul %7, %8, %cst_7 {dimension_numbers = #tpu.dot_dimension_numbers<[1], [0], [0], [1], [0, 0, 1, 1], [], []>} : vector<8x128xf32>, vector<128x128xf32>, vector<8x128xf32> -> vector<8x128xf32>
    %10 = arith.addf %9, %2 : vector<8x128xf32>
    %cst_8 = arith.constant -0.00608250778 : f32
    %cst_9 = arith.constant 0.00608250778 : f32
    %11 = vector.broadcast %cst_8 : f32 to vector<8x128xf32>
    %12 = arith.maximumf %11, %10 : vector<8x128xf32>
    %13 = vector.broadcast %cst_9 : f32 to vector<8x128xf32>
    %14 = arith.minimumf %13, %12 : vector<8x128xf32>
    %15 = arith.subf %10, %14 : vector<8x128xf32>
    %c0_10 = arith.constant 0 : index
    %c0_11 = arith.constant 0 : index
    %16 = vector.load %arg1[%c0_10, %c0_11] : memref<128x128xf32, #tpu.memory_space<vmem>>, vector<128x128xf32>
    %cst_12 = arith.constant dense<0.000000e+00> : vector<8x128xf32>
    %17 = tpu.matmul %15, %16, %cst_12 {dimension_numbers = #tpu.dot_dimension_numbers<[1], [0], [0], [1], [0, 0, 1, 1], [], []>} : vector<8x128xf32>, vector<128x128xf32>, vector<8x128xf32> -> vector<8x128xf32>
    %18 = arith.addf %17, %2 : vector<8x128xf32>
    %cst_13 = arith.constant -0.00608250778 : f32
    %cst_14 = arith.constant 0.00608250778 : f32
    %19 = vector.broadcast %cst_13 : f32 to vector<8x128xf32>
    %20 = arith.maximumf %19, %18 : vector<8x128xf32>
    %21 = vector.broadcast %cst_14 : f32 to vector<8x128xf32>
    %22 = arith.minimumf %21, %20 : vector<8x128xf32>
    %23 = arith.subf %18, %22 : vector<8x128xf32>
    %c0_15 = arith.constant 0 : index
    %c0_16 = arith.constant 0 : index
    %24 = vector.load %arg4[%c0_15, %c0_16] : memref<8x128xf32, #tpu.memory_space<vmem>>, vector<8x128xf32>
    tpu.vector_store %arg4[%c0_15, %c0_16], %23 {strides = array<i32>} : memref<8x128xf32, #tpu.memory_space<vmem>>, vector<8x128xf32>,
    return
  }
  func.func @transform_0(%arg0: i32) -> (i32, i32) {
    %c0_i32 = arith.constant 0 : i32
    %c0_i32_0 = arith.constant 0 : i32
    %c0_i32_1 = arith.constant 0 : i32
    return %c0_i32, %c0_i32_0 : i32, i32
  }
  func.func @transform_1(%arg0: i32) -> (i32, i32) {
    %c0_i32 = arith.constant 0 : i32
    %c0_i32_0 = arith.constant 0 : i32
    %c0_i32_1 = arith.constant 0 : i32
    return %c0_i32, %c0_i32_0 : i32, i32
  }
  func.func @transform_2(%arg0: i32) -> (i32, i32) {
    %c0_i32 = arith.constant 0 : i32
    %c0_i32_0 = arith.constant 0 : i32
    return %arg0, %c0_i32 : i32, i32
  }
  func.func @transform_3(%arg0: i32) -> (i32, i32) {
    %c0_i32 = arith.constant 0 : i32
    %c0_i32_0 = arith.constant 0 : i32
    return %arg0, %c0_i32 : i32, i32
  }
}

</mosaic_0001>

<bundles_post_ra>
// kernel: tpu_custom_call.1
= control target key start
LH: loop header
LB: loop body
LE: loop exit
PB: predicated region body
PF: predicated region fallthrough
CT: control target
= control target key end

     0   :  { %8 = vsyncpa [#allocation3], 0  ;;  %s771_s0 = inlined_call_operand.hbm [shape: f32[128,128], index: 0, kind: input, shape index: {}]   ;;  %s772_s1 = inlined_call_operand.hbm [shape: f32[128,128], index: 1, kind: input, shape index: {}]   ;;  %s773_s2 = inlined_call_operand.hbm [shape: f32[8,128], index: 2, kind: input, shape index: {}]   ;;  %s774_s3 = inlined_call_operand.hbm [shape: f32[8,128], index: 3, kind: output, shape index: {}]  }
   0x1   :  { %9 = vsyncpa [#allocation6], 0 }
   0x2   :  { %10 = vsyncpa [#allocation4], 0  ;;  %s657_s12 = smov [#allocation5]   ;;  %s658_s14 = smov [#allocation2]  }
   0x3   :  { %s28_s13 = sshll.u32 %s657_s12, 4  ;;  %s16_s15 = sshll.u32 %s658_s14, 4  ;;  %s29_s13 = int_to_ptr.vmem [resolvable:$true] %s28_s13  ;;  %s686_s15 = int_to_ptr.vmem [resolvable:$true] %s16_s15 }
   0x4   :  { %s563_s18 = scalar_lea.hbm %s772_s1, 2048 }
   0x5   :  { %p564_p0 = scmp.ne.s32.totalorder %s772_s1, %s563_s18  ;;  %p567_p1 = scmp.lt.u32.totalorder %s563_s18, %s772_s1 }
   0x7   :  { %p569_p2 = pnand %p567_p1, %p564_p0 }
   0x9   :  { %572 = shalt.err (!%p569_p2)
}
   0xa   :  { %s573_s23 = scalar_lea.vmem %s29_s13, 2048  ;;  %p578_p4 = scmp.lt.s32.totalorder %s29_s13, %s29_s13 }
   0xb   :  { %p574_p3 = scmp.ne.s32.totalorder %s29_s13, %s573_s23  ;;  %p579_p5 = scmp.lt.s32.totalorder %s573_s23, %s573_s23 }
   0xd   :  { %p580_p6 = por %p579_p5, %p578_p4 }
   0xf   :  { %p581_p7 = pnand %p580_p6, %p574_p3 }
  0x11   :  { %584 = shalt.err (!%p581_p7)
}
  0x12   :  { %s659_s24 = smov 128   ;;  %s660_s25 = smov 8  }
  0x13   :  { %34 = dma.hbm_to_vmem [thread:$0]  %s772_s1, 2048, %s29_s13, [#allocation6], %s659_s24, %s659_s24, %s660_s25  }
  0x14   :  { %s585_s30 = scalar_lea.hbm %s771_s0, 2048 }
  0x15   :  { %p586_p8 = scmp.ne.s32.totalorder %s771_s0, %s585_s30  ;;  %p589_p9 = scmp.lt.u32.totalorder %s585_s30, %s771_s0 }
  0x17   :  { %p591_p10 = pnand %p589_p9, %p586_p8 }
  0x19   :  { %594 = shalt.err (!%p591_p10)
}
  0x1a   :  { %s595_s8 = scalar_lea.vmem %s686_s15, 2048  ;;  %p600_p12 = scmp.lt.s32.totalorder %s686_s15, %s686_s15 }
  0x1b   :  { %p596_p11 = scmp.ne.s32.totalorder %s686_s15, %s595_s8  ;;  %p601_p13 = scmp.lt.s32.totalorder %s595_s8, %s595_s8 }
  0x1d   :  { %p602_p0 = por %p601_p13, %p600_p12 }
  0x1f   :  { %p603_p1 = pnand %p602_p0, %p596_p11 }
  0x21   :  { %606 = shalt.err (!%p603_p1)
}
  0x22   :  { %22 = dma.hbm_to_vmem [thread:$0]  %s771_s0, 2048, %s686_s15, [#allocation3], %s659_s24, %s659_s24, %s660_s25  }
  0x23   :  { %s661_s10 = smov [#allocation7]   ;;  %s607_s14 = scalar_lea.hbm %s773_s2, 128 }
  0x24   :  { %s41_s11 = sshll.u32 %s661_s10, 4  ;;  %p608_p2 = scmp.ne.s32.totalorder %s773_s2, %s607_s14  ;;  %s42_s11 = int_to_ptr.vmem [resolvable:$true] %s41_s11 }
  0x25   :  { %p611_p3 = scmp.lt.u32.totalorder %s607_s14, %s773_s2 }
  0x27   :  { %p613_p4 = pnand %p611_p3, %p608_p2 }
  0x29   :  { %616 = shalt.err (!%p613_p4)
}
  0x2a   :  { %s617_s20 = scalar_lea.vmem %s42_s11, 128  ;;  %p622_p6 = scmp.lt.s32.totalorder %s42_s11, %s42_s11 }
  0x2b   :  { %p618_p5 = scmp.ne.s32.totalorder %s42_s11, %s617_s20  ;;  %p623_p7 = scmp.lt.s32.totalorder %s617_s20, %s617_s20 }
  0x2d   :  { %p624_p8 = por %p623_p7, %p622_p6 }
  0x2f   :  { %p625_p9 = pnand %p624_p8, %p618_p5 }
  0x31   :  { %628 = shalt.err (!%p625_p9)
}
  0x32   :  { %44 = dma.hbm_to_vmem [thread:$0]  %s773_s2, 128, %s42_s11, [#allocation6]  }
  0x33   :  { %651 = dma.done.wait [#allocation3], 2048  }
  0x34   :  { %652 = vsyncadd [#allocation3], 4294965248 }
  0x35   :  { %653 = dma.done.wait [#allocation6], 2176  }
  0x36   :  { %654 = vsyncadd [#allocation6], 4294965120  ;;  %v662_v0 = vmov 0.0|0.0   ;;  %vm663_vm0 = vmmov 0   ;;  %v664_v1 = vmov 0.0   ;;  %v55_v2 = vld [vmem:[#allocation5] sm:$0xff] }
  0x37   :  { %482 = vmatprep.subr.bf16.mxu0 %v662_v0  ;;  %409 = vmatprep.mubr.msk.f32.mxu0 %vm663_vm0, %v664_v1  ;;  %v56_v3 = vld [vmem:[#allocation5 + $0x8] sm:$0xff]  ;;  %v57_v4 = vld [vmem:[#allocation5 + $0x10] sm:$0xff]  ;;  %v58_v6 = vld [vmem:[#allocation5 + $0x18] sm:$0xff]  ;;  %s665_s2 = smov [#allocation8]  }
  0x38   :  { %506 = vmatprep.subr.bf16.mxu1 %v662_v0  ;;  %444 = vmatprep.mubr.msk.f32.mxu1 %vm663_vm0, %v664_v1  ;;  %v483_v5 = vpack.c.bf16 %v56_v3, %v55_v2  ;;  %v486_v7 = vpack.c.bf16 %v58_v6, %v57_v4  ;;  %v59_v8 = vld [vmem:[#allocation5 + $0x20] sm:$0xff]  ;;  %v60_v9 = vld [vmem:[#allocation5 + $0x28] sm:$0xff]  ;;  %v146_v12 = vld [vmem:[#allocation2 + $0x10] sm:$0xff]  ;;  %s313_s21 = sshll.u32 %s665_s2, 4  ;;  %s314_s21 = int_to_ptr.vmem [resolvable:$true] %s313_s21 }
  0x39   :  { %v144_v10 = vld [vmem:[#allocation2] sm:$0xff]  ;;  %v145_v11 = vld [vmem:[#allocation2 + $0x8] sm:$0xff]  ;;  %v147_v13 = vld [vmem:[#allocation2 + $0x18] sm:$0xff]  ;;  %v489_v14 = vpack.c.bf16 %v60_v9, %v59_v8  ;;  %s629_s22 = scalar_lea.vmem %s314_s21, 128  ;;  %p634_p11 = scmp.lt.s32.totalorder %s314_s21, %s314_s21 }
  0x3a   :  { %484 = vmatpush3.bf16.msra.mxu0 %v483_v5  ;;  %v507_v15 = vpack.c.bf16 %v145_v11, %v144_v10  ;;  %v61_v16 = vld [vmem:[#allocation5 + $0x30] sm:$0xff]  ;;  %v62_v17 = vld [vmem:[#allocation5 + $0x38] sm:$0xff]  ;;  %v510_v18 = vpack.c.bf16 %v147_v13, %v146_v12  ;;  %v148_v19 = vld [vmem:[#allocation2 + $0x20] sm:$0xff]  ;;  %p630_p10 = scmp.ne.s32.totalorder %s314_s21, %s629_s22  ;;  %p635_p12 = scmp.lt.s32.totalorder %s629_s22, %s629_s22 }
  0x3b   :  { %485 = vmatprep.subr.bf16.mxu0 %v662_v0  ;;  %v149_v20 = vld [vmem:[#allocation2 + $0x28] sm:$0xff]  ;;  %v492_v21 = vpack.c.bf16 %v62_v17, %v61_v16  ;;  %v63_v22 = vld [vmem:[#allocation5 + $0x40] sm:$0xff]  ;;  %v150_v25 = vld [vmem:[#allocation2 + $0x30] sm:$0xff] }
  0x3c   :  { %508 = vmatpush3.bf16.msra.mxu1 %v507_v15  ;;  %v64_v23 = vld [vmem:[#allocation5 + $0x48] sm:$0xff]  ;;  %v513_v24 = vpack.c.bf16 %v149_v20, %v148_v19  ;;  %v151_v26 = vld [vmem:[#allocation2 + $0x38] sm:$0xff]  ;;  %v65_v28 = vld [vmem:[#allocation5 + $0x50] sm:$0xff]  ;;  %p636_p13 = por %p635_p12, %p634_p11 }
  0x3d   :  { %509 = vmatprep.subr.bf16.mxu1 %v662_v0  ;;  %v495_v27 = vpack.c.bf16 %v64_v23, %v63_v22  ;;  %v66_v29 = vld [vmem:[#allocation5 + $0x58] sm:$0xff]  ;;  %v516_v30 = vpack.c.bf16 %v151_v26, %v150_v25  ;;  %v152_v31 = vld [vmem:[#allocation2 + $0x40] sm:$0xff]  ;;  %v153_v32 = vld [vmem:[#allocation2 + $0x48] sm:$0xff] }
  0x3e   :  { %487 = vmatpush3.bf16.msra.mxu0 %v486_v7  ;;  %v498_v33 = vpack.c.bf16 %v66_v29, %v65_v28  ;;  %v67_v34 = vld [vmem:[#allocation5 + $0x60] sm:$0xff]  ;;  %v68_v35 = vld [vmem:[#allocation5 + $0x68] sm:$0xff]  ;;  %v519_v36 = vpack.c.bf16 %v153_v32, %v152_v31  ;;  %v154_v37 = vld [vmem:[#allocation2 + $0x50] sm:$0xff]  ;;  %p637_p0 = pnand %p636_p13, %p630_p10 }
  0x3f   :  { %488 = vmatprep.subr.bf16.mxu0 %v662_v0  ;;  %v155_v38 = vld [vmem:[#allocation2 + $0x58] sm:$0xff]  ;;  %v501_v39 = vpack.c.bf16 %v68_v35, %v67_v34  ;;  %v69_v40 = vld [vmem:[#allocation5 + $0x70] sm:$0xff]  ;;  %v156_v43 = vld [vmem:[#allocation2 + $0x60] sm:$0xff] }
  0x40   :  { %511 = vmatpush3.bf16.msra.mxu1 %v510_v18  ;;  %v70_v41 = vld [vmem:[#allocation5 + $0x78] sm:$0xff]  ;;  %v522_v42 = vpack.c.bf16 %v155_v38, %v154_v37  ;;  %v157_v44 = vld [vmem:[#allocation2 + $0x68] sm:$0xff]  ;;  %v54_v47 = vld [vmem:[#allocation7] sm:$0xff] }
  0x41   :  { %512 = vmatprep.subr.bf16.mxu1 %v662_v0  ;;  %v504_v45 = vpack.c.bf16 %v70_v41, %v69_v40  ;;  %v525_v46 = vpack.c.bf16 %v157_v44, %v156_v43  ;;  %v158_v48 = vld [vmem:[#allocation2 + $0x70] sm:$0xff]  ;;  %v159_v49 = vld [vmem:[#allocation2 + $0x78] sm:$0xff] }
  0x42   :  { %490 = vmatpush3.bf16.msra.mxu0 %v489_v14  ;;  %v528_v50 = vpack.c.bf16 %v159_v49, %v158_v48 }
  0x43   :  { %491 = vmatprep.subr.bf16.mxu0 %v662_v0 }
  0x44   :  { %514 = vmatpush3.bf16.msra.mxu1 %v513_v24 }
  0x45   :  { %515 = vmatprep.subr.bf16.mxu1 %v662_v0 }
  0x46   :  { %493 = vmatpush3.bf16.msra.mxu0 %v492_v21 }
  0x47   :  { %494 = vmatprep.subr.bf16.mxu0 %v662_v0 }
  0x48   :  { %517 = vmatpush3.bf16.msra.mxu1 %v516_v30 }
  0x49   :  { %518 = vmatprep.subr.bf16.mxu1 %v662_v0 }
  0x4a   :  { %496 = vmatpush3.bf16.msra.mxu0 %v495_v27 }
  0x4b   :  { %497 = vmatprep.subr.bf16.mxu0 %v662_v0 }
  0x4c   :  { %520 = vmatpush3.bf16.msra.mxu1 %v519_v36 }
  0x4d   :  { %521 = vmatprep.subr.bf16.mxu1 %v662_v0 }
  0x4e   :  { %499 = vmatpush3.bf16.msra.mxu0 %v498_v33 }
  0x4f   :  { %500 = vmatprep.subr.bf16.mxu0 %v662_v0 }
  0x50   :  { %523 = vmatpush3.bf16.msra.mxu1 %v522_v42 }
  0x51   :  { %524 = vmatprep.subr.bf16.mxu1 %v662_v0 }
  0x52   :  { %502 = vmatpush3.bf16.msra.mxu0 %v501_v39 }
  0x53   :  { %503 = vmatprep.subr.bf16.mxu0 %v662_v0 }
  0x54   :  { %526 = vmatpush3.bf16.msra.mxu1 %v525_v46 }
  0x55   :  { %527 = vmatprep.subr.bf16.mxu1 %v662_v0 }
  0x56   :  { %505 = vmatpush3.bf16.msra.mxu0 %v504_v45 }
  0x57   :  { %530 = vmatprep.subr.bf16.mxu0 %v662_v0 }
  0x58   :  { %529 = vmatpush3.bf16.msra.mxu1 %v528_v50 }
  0x59   :  { %410 = vmatmul.mubr.f32.vlgmr.msra.gmra.mrb[0].mxu0 %v54_v47 }
  0x5a   :  { %532 = vmatpush3.bf16.msra.mxu0 %v507_v15  ;;  %479 = vmatprep.mubr.msk.f32.mxu0 %vm663_vm0, %v664_v1 }
  0x5b   :  { %533 = vmatprep.subr.bf16.mxu0 %v662_v0 }
  0x5e   :  { %535 = vmatpush3.bf16.msra.mxu0 %v510_v18 }
  0x5f   :  { %536 = vmatprep.subr.bf16.mxu0 %v662_v0 }
  0x62   :  { %538 = vmatpush3.bf16.msra.mxu0 %v513_v24 }
  0x63   :  { %539 = vmatprep.subr.bf16.mxu0 %v662_v0 }
  0x66   :  { %541 = vmatpush3.bf16.msra.mxu0 %v516_v30 }
  0x67   :  { %542 = vmatprep.subr.bf16.mxu0 %v662_v0 }
  0x6a   :  { %544 = vmatpush3.bf16.msra.mxu0 %v519_v36 }
  0x6b   :  { %545 = vmatprep.subr.bf16.mxu0 %v662_v0 }
  0x6e   :  { %547 = vmatpush3.bf16.msra.mxu0 %v522_v42 }
  0x6f   :  { %548 = vmatprep.subr.bf16.mxu0 %v662_v0 }
  0x72   :  { %550 = vmatpush3.bf16.msra.mxu0 %v525_v46 }
  0x73   :  { %551 = vmatprep.subr.bf16.mxu0 %v662_v0 }
  0x76   :  { %553 = vmatpush3.bf16.msra.mxu0 %v528_v50 }
 0x12c   :  { %v137_v51 = vpop.f32.mrb[0].mxu0 }
 0x12d   :  { %v323_v52 = vclamps-f32 %v137_v51, 0.006082508  ;;  %v411_v53 = vpop.f32.mrb[1].mxu0 }
 0x12f   :  { %v143_v54 = vsub.f32 %v137_v51, %v323_v52 }
 0x131   :  { %445 = vmatmul.mubr.f32.vlgmr.msra.gmra.mrb[0].mxu1 %v143_v54 }
 0x204   :  { %v226_v55 = vpop.f32.mrb[0].mxu1 }
 0x205   :  { %v227_v56 = vadd.f32 %v226_v55, %v137_v51  ;;  %v446_v57 = vpop.f32.mrb[1].mxu1 }
 0x207   :  { %v324_v58 = vclamps-f32 %v227_v56, 0.006082508 }
 0x209   :  { %v232_v59 = vsub.f32 %v227_v56, %v324_v58 }
 0x20b   :  { %480 = vmatmul.mubr.f32.vlgmr.msra.gmra.mrb[2].mxu0 %v232_v59 }
 0x2de   :  { %v299_v60 = vpop.f32.mrb[2].mxu0 }
 0x2df   :  { %v300_v61 = vadd.f32 %v299_v60, %v137_v51  ;;  %v481_v62 = vpop.f32.mrb[3].mxu0 }
 0x2e1   :  { %v325_v63 = vclamps-f32 %v300_v61, 0.006082508 }
 0x2e3   :  { %v305_v0 = vsub.f32 %v300_v61, %v325_v63 }
 0x2e5   :  { %306 = vst [vmem:[#allocation8] sm:$0xff] %v305_v0 }
 0x2e6   :  { %640 = shalt.err (!%p637_p0)
}
 0x2e7   :  { %s641_s25 = scalar_lea.hbm %s774_s3, 128 }
 0x2e8   :  { %p642_p1 = scmp.ne.s32.totalorder %s774_s3, %s641_s25  ;;  %p645_p2 = scmp.lt.u32.totalorder %s641_s25, %s774_s3 }
 0x2ea   :  { %p647_p3 = pnand %p645_p2, %p642_p1 }
 0x2ec   :  { %650 = shalt.err (!%p647_p3)
}
 0x2ed   :  { %316 = dma.vmem_to_hbm [thread:$0]  %s314_s21, 128, %s774_s3, [#allocation4]  }
 0x2ee   :  { %655 = dma.done.wait [#allocation4], 128  }
 0x2ef   :  { %656 = vsyncadd [#allocation4], 4294967168 }
 0x2f0   :  { %320 = vsyncpa [#allocation3], 1 }
 0x2f1   :  { %321 = vsyncpa [#allocation6], 1 }
 0x2f2   :  { %322 = vsyncpa [#allocation4], 1 }

// kernel: tpu_custom_call.1
= control target key start
LH: loop header
LB: loop body
LE: loop exit
PB: predicated region body
PF: predicated region fallthrough
CT: control target
= control target key end

     0   :  { %8 = vsyncpa [#allocation3], 0  ;;  %s771_s0 = inlined_call_operand.hbm [shape: f32[128,128], index: 0, kind: input, shape index: {}]   ;;  %s772_s1 = inlined_call_operand.hbm [shape: f32[128,128], index: 1, kind: input, shape index: {}]   ;;  %s773_s2 = inlined_call_operand.hbm [shape: f32[8,128], index: 2, kind: input, shape index: {}]   ;;  %s774_s3 = inlined_call_operand.hbm [shape: f32[8,128], index: 3, kind: output, shape index: {}]  }
   0x1   :  { %9 = vsyncpa [#allocation6], 0 }
   0x2   :  { %10 = vsyncpa [#allocation4], 0  ;;  %s657_s12 = smov [#allocation5]   ;;  %s658_s14 = smov [#allocation2]  }
   0x3   :  { %s28_s13 = sshll.u32 %s657_s12, 4  ;;  %s16_s15 = sshll.u32 %s658_s14, 4  ;;  %s29_s13 = int_to_ptr.vmem [resolvable:$true] %s28_s13  ;;  %s686_s15 = int_to_ptr.vmem [resolvable:$true] %s16_s15 }
   0x4   :  { %s563_s18 = scalar_lea.hbm %s772_s1, 2048 }
   0x5   :  { %p564_p0 = scmp.ne.s32.totalorder %s772_s1, %s563_s18  ;;  %p567_p1 = scmp.lt.u32.totalorder %s563_s18, %s772_s1 }
   0x7   :  { %p569_p2 = pnand %p567_p1, %p564_p0 }
   0x9   :  { %572 = shalt.err (!%p569_p2)
}
   0xa   :  { %s573_s23 = scalar_lea.vmem %s29_s13, 2048  ;;  %p578_p4 = scmp.lt.s32.totalorder %s29_s13, %s29_s13 }
   0xb   :  { %p574_p3 = scmp.ne.s32.totalorder %s29_s13, %s573_s23  ;;  %p579_p5 = scmp.lt.s32.totalorder %s573_s23, %s573_s23 }
   0xd   :  { %p580_p6 = por %p579_p5, %p578_p4 }
   0xf   :  { %p581_p7 = pnand %p580_p6, %p574_p3 }
  0x11   :  { %584 = shalt.err (!%p581_p7)
}
  0x12   :  { %s659_s24 = smov 128   ;;  %s660_s25 = smov 8  }
  0x13   :  { %34 = dma.hbm_to_vmem [thread:$0]  %s772_s1, 2048, %s29_s13, [#allocation6], %s659_s24, %s659_s24, %s660_s25  }
  0x14   :  { %s585_s30 = scalar_lea.hbm %s771_s0, 2048 }
  0x15   :  { %p586_p8 = scmp.ne.s32.totalorder %s771_s0, %s585_s30  ;;  %p589_p9 = scmp.lt.u32.totalorder %s585_s30, %s771_s0 }
  0x17   :  { %p591_p10 = pnand %p589_p9, %p586_p8 }
  0x19   :  { %594 = shalt.err (!%p591_p10)
}
  0x1a   :  { %s595_s8 = scalar_lea.vmem %s686_s15, 2048  ;;  %p600_p12 = scmp.lt.s32.totalorder %s686_s15, %s686_s15 }
  0x1b   :  { %p596_p11 = scmp.ne.s32.totalorder %s686_s15, %s595_s8  ;;  %p601_p13 = scmp.lt.s32.totalorder %s595_s8, %s595_s8 }
  0x1d   :  { %p602_p0 = por %p601_p13, %p600_p12 }
  0x1f   :  { %p603_p1 = pnand %p602_p0, %p596_p11 }
  0x21   :  { %606 = shalt.err (!%p603_p1)
}
  0x22   :  { %22 = dma.hbm_to_vmem [thread:$0]  %s771_s0, 2048, %s686_s15, [#allocation3], %s659_s24, %s659_s24, %s660_s25  }
  0x23   :  { %s661_s10 = smov [#allocation7]   ;;  %s607_s14 = scalar_lea.hbm %s773_s2, 128 }
  0x24   :  { %s41_s11 = sshll.u32 %s661_s10, 4  ;;  %p608_p2 = scmp.ne.s32.totalorder %s773_s2, %s607_s14  ;;  %s42_s11 = int_to_ptr.vmem [resolvable:$true] %s41_s11 }
  0x25   :  { %p611_p3 = scmp.lt.u32.totalorder %s607_s14, %s773_s2 }
  0x27   :  { %p613_p4 = pnand %p611_p3, %p608_p2 }
  0x29   :  { %616 = shalt.err (!%p613_p4)
}
  0x2a   :  { %s617_s20 = scalar_lea.vmem %s42_s11, 128  ;;  %p622_p6 = scmp.lt.s32.totalorder %s42_s11, %s42_s11 }
  0x2b   :  { %p618_p5 = scmp.ne.s32.totalorder %s42_s11, %s617_s20  ;;  %p623_p7 = scmp.lt.s32.totalorder %s617_s20, %s617_s20 }
  0x2d   :  { %p624_p8 = por %p623_p7, %p622_p6 }
  0x2f   :  { %p625_p9 = pnand %p624_p8, %p618_p5 }
  0x31   :  { %628 = shalt.err (!%p625_p9)
}
  0x32   :  { %44 = dma.hbm_to_vmem [thread:$0]  %s773_s2, 128, %s42_s11, [#allocation6]  }
  0x33   :  { %651 = dma.done.wait [#allocation3], 2048  }
  0x34   :  { %652 = vsyncadd [#allocation3], 4294965248 }
  0x35   :  { %653 = dma.done.wait [#allocation6], 2176  }
  0x36   :  { %654 = vsyncadd [#allocation6], 4294965120  ;;  %v662_v0 = vmov 0.0|0.0   ;;  %vm663_vm0 = vmmov 0   ;;  %v664_v1 = vmov 0.0   ;;  %v55_v2 = vld [vmem:[#allocation5] sm:$0xff] }
  0x37   :  { %482 = vmatprep.subr.bf16.mxu0 %v662_v0  ;;  %409 = vmatprep.mubr.msk.f32.mxu0 %vm663_vm0, %v664_v1  ;;  %v56_v3 = vld [vmem:[#allocation5 + $0x8] sm:$0xff]  ;;  %v57_v4 = vld [vmem:[#allocation5 + $0x10] sm:$0xff]  ;;  %v58_v6 = vld [vmem:[#allocation5 + $0x18] sm:$0xff]  ;;  %s665_s2 = smov [#allocation8]  }
  0x38   :  { %506 = vmatprep.subr.bf16.mxu1 %v662_v0  ;;  %444 = vmatprep.mubr.msk.f32.mxu1 %vm663_vm0, %v664_v1  ;;  %v483_v5 = vpack.c.bf16 %v56_v3, %v55_v2  ;;  %v486_v7 = vpack.c.bf16 %v58_v6, %v57_v4  ;;  %v59_v8 = vld [vmem:[#allocation5 + $0x20] sm:$0xff]  ;;  %v60_v9 = vld [vmem:[#allocation5 + $0x28] sm:$0xff]  ;;  %v146_v12 = vld [vmem:[#allocation2 + $0x10] sm:$0xff]  ;;  %s313_s21 = sshll.u32 %s665_s2, 4  ;;  %s314_s21 = int_to_ptr.vmem [resolvable:$true] %s313_s21 }
  0x39   :  { %v144_v10 = vld [vmem:[#allocation2] sm:$0xff]  ;;  %v145_v11 = vld [vmem:[#allocation2 + $0x8] sm:$0xff]  ;;  %v147_v13 = vld [vmem:[#allocation2 + $0x18] sm:$0xff]  ;;  %v489_v14 = vpack.c.bf16 %v60_v9, %v59_v8  ;;  %s629_s22 = scalar_lea.vmem %s314_s21, 128  ;;  %p634_p11 = scmp.lt.s32.totalorder %s314_s21, %s314_s21 }
  0x3a   :  { %484 = vmatpush3.bf16.msra.mxu0 %v483_v5  ;;  %v507_v15 = vpack.c.bf16 %v145_v11, %v144_v10  ;;  %v61_v16 = vld [vmem:[#allocation5 + $0x30] sm:$0xff]  ;;  %v62_v17 = vld [vmem:[#allocation5 + $0x38] sm:$0xff]  ;;  %v510_v18 = vpack.c.bf16 %v147_v13, %v146_v12  ;;  %v148_v19 = vld [vmem:[#allocation2 + $0x20] sm:$0xff]  ;;  %p630_p10 = scmp.ne.s32.totalorder %s314_s21, %s629_s22  ;;  %p635_p12 = scmp.lt.s32.totalorder %s629_s22, %s629_s22 }
  0x3b   :  { %485 = vmatprep.subr.bf16.mxu0 %v662_v0  ;;  %v149_v20 = vld [vmem:[#allocation2 + $0x28] sm:$0xff]  ;;  %v492_v21 = vpack.c.bf16 %v62_v17, %v61_v16  ;;  %v63_v22 = vld [vmem:[#allocation5 + $0x40] sm:$0xff]  ;;  %v150_v25 = vld [vmem:[#allocation2 + $0x30] sm:$0xff] }
  0x3c   :  { %508 = vmatpush3.bf16.msra.mxu1 %v507_v15  ;;  %v64_v23 = vld [vmem:[#allocation5 + $0x48] sm:$0xff]  ;;  %v513_v24 = vpack.c.bf16 %v149_v20, %v148_v19  ;;  %v151_v26 = vld [vmem:[#allocation2 + $0x38] sm:$0xff]  ;;  %v65_v28 = vld [vmem:[#allocation5 + $0x50] sm:$0xff]  ;;  %p636_p13 = por %p635_p12, %p634_p11 }
  0x3d   :  { %509 = vmatprep.subr.bf16.mxu1 %v662_v0  ;;  %v495_v27 = vpack.c.bf16 %v64_v23, %v63_v22  ;;  %v66_v29 = vld [vmem:[#allocation5 + $0x58] sm:$0xff]  ;;  %v516_v30 = vpack.c.bf16 %v151_v26, %v150_v25  ;;  %v152_v31 = vld [vmem:[#allocation2 + $0x40] sm:$0xff]  ;;  %v153_v32 = vld [vmem:[#allocation2 + $0x48] sm:$0xff] }
  0x3e   :  { %487 = vmatpush3.bf16.msra.mxu0 %v486_v7  ;;  %v498_v33 = vpack.c.bf16 %v66_v29, %v65_v28  ;;  %v67_v34 = vld [vmem:[#allocation5 + $0x60] sm:$0xff]  ;;  %v68_v35 = vld [vmem:[#allocation5 + $0x68] sm:$0xff]  ;;  %v519_v36 = vpack.c.bf16 %v153_v32, %v152_v31  ;;  %v154_v37 = vld [vmem:[#allocation2 + $0x50] sm:$0xff]  ;;  %p637_p0 = pnand %p636_p13, %p630_p10 }
  0x3f   :  { %488 = vmatprep.subr.bf16.mxu0 %v662_v0  ;;  %v155_v38 = vld [vmem:[#allocation2 + $0x58] sm:$0xff]  ;;  %v501_v39 = vpack.c.bf16 %v68_v35, %v67_v34  ;;  %v69_v40 = vld [vmem:[#allocation5 + $0x70] sm:$0xff]  ;;  %v156_v43 = vld [vmem:[#allocation2 + $0x60] sm:$0xff] }
  0x40   :  { %511 = vmatpush3.bf16.msra.mxu1 %v510_v18  ;;  %v70_v41 = vld [vmem:[#allocation5 + $0x78] sm:$0xff]  ;;  %v522_v42 = vpack.c.bf16 %v155_v38, %v154_v37  ;;  %v157_v44 = vld [vmem:[#allocation2 + $0x68] sm:$0xff]  ;;  %v54_v47 = vld [vmem:[#allocation7] sm:$0xff] }
  0x41   :  { %512 = vmatprep.subr.bf16.mxu1 %v662_v0  ;;  %v504_v45 = vpack.c.bf16 %v70_v41, %v69_v40  ;;  %v525_v46 = vpack.c.bf16 %v157_v44, %v156_v43  ;;  %v158_v48 = vld [vmem:[#allocation2 + $0x70] sm:$0xff]  ;;  %v159_v49 = vld [vmem:[#allocation2 + $0x78] sm:$0xff] }
  0x42   :  { %490 = vmatpush3.bf16.msra.mxu0 %v489_v14  ;;  %v528_v50 = vpack.c.bf16 %v159_v49, %v158_v48 }
  0x43   :  { %491 = vmatprep.subr.bf16.mxu0 %v662_v0 }
  0x44   :  { %514 = vmatpush3.bf16.msra.mxu1 %v513_v24 }
  0x45   :  { %515 = vmatprep.subr.bf16.mxu1 %v662_v0 }
  0x46   :  { %493 = vmatpush3.bf16.msra.mxu0 %v492_v21 }
  0x47   :  { %494 = vmatprep.subr.bf16.mxu0 %v662_v0 }
  0x48   :  { %517 = vmatpush3.bf16.msra.mxu1 %v516_v30 }
  0x49   :  { %518 = vmatprep.subr.bf16.mxu1 %v662_v0 }
  0x4a   :  { %496 = vmatpush3.bf16.msra.mxu0 %v495_v27 }
  0x4b   :  { %497 = vmatprep.subr.bf16.mxu0 %v662_v0 }
  0x4c   :  { %520 = vmatpush3.bf16.msra.mxu1 %v519_v36 }
  0x4d   :  { %521 = vmatprep.subr.bf16.mxu1 %v662_v0 }
  0x4e   :  { %499 = vmatpush3.bf16.msra.mxu0 %v498_v33 }
  0x4f   :  { %500 = vmatprep.subr.bf16.mxu0 %v662_v0 }
  0x50   :  { %523 = vmatpush3.bf16.msra.mxu1 %v522_v42 }
  0x51   :  { %524 = vmatprep.subr.bf16.mxu1 %v662_v0 }
  0x52   :  { %502 = vmatpush3.bf16.msra.mxu0 %v501_v39 }
  0x53   :  { %503 = vmatprep.subr.bf16.mxu0 %v662_v0 }
  0x54   :  { %526 = vmatpush3.bf16.msra.mxu1 %v525_v46 }
  0x55   :  { %527 = vmatprep.subr.bf16.mxu1 %v662_v0 }
  0x56   :  { %505 = vmatpush3.bf16.msra.mxu0 %v504_v45 }
  0x57   :  { %530 = vmatprep.subr.bf16.mxu0 %v662_v0 }
  0x58   :  { %529 = vmatpush3.bf16.msra.mxu1 %v528_v50 }
  0x59   :  { %410 = vmatmul.mubr.f32.vlgmr.msra.gmra.mrb[0].mxu0 %v54_v47 }
  0x5a   :  { %532 = vmatpush3.bf16.msra.mxu0 %v507_v15  ;;  %479 = vmatprep.mubr.msk.f32.mxu0 %vm663_vm0, %v664_v1 }
  0x5b   :  { %533 = vmatprep.subr.bf16.mxu0 %v662_v0 }
  0x5e   :  { %535 = vmatpush3.bf16.msra.mxu0 %v510_v18 }
  0x5f   :  { %536 = vmatprep.subr.bf16.mxu0 %v662_v0 }
  0x62   :  { %538 = vmatpush3.bf16.msra.mxu0 %v513_v24 }
  0x63   :  { %539 = vmatprep.subr.bf16.mxu0 %v662_v0 }
  0x66   :  { %541 = vmatpush3.bf16.msra.mxu0 %v516_v30 }
  0x67   :  { %542 = vmatprep.subr.bf16.mxu0 %v662_v0 }
  0x6a   :  { %544 = vmatpush3.bf16.msra.mxu0 %v519_v36 }
  0x6b   :  { %545 = vmatprep.subr.bf16.mxu0 %v662_v0 }
  0x6e   :  { %547 = vmatpush3.bf16.msra.mxu0 %v522_v42 }
  0x6f   :  { %548 = vmatprep.subr.bf16.mxu0 %v662_v0 }
  0x72   :  { %550 = vmatpush3.bf16.msra.mxu0 %v525_v46 }
  0x73   :  { %551 = vmatprep.subr.bf16.mxu0 %v662_v0 }
  0x76   :  { %553 = vmatpush3.bf16.msra.mxu0 %v528_v50 }
 0x12c   :  { %v137_v51 = vpop.f32.mrb[0].mxu0 }
 0x12d   :  { %v323_v52 = vclamps-f32 %v137_v51, 0.006082508  ;;  %v411_v53 = vpop.f32.mrb[1].mxu0 }
 0x12f   :  { %v143_v54 = vsub.f32 %v137_v51, %v323_v52 }
 0x131   :  { %445 = vmatmul.mubr.f32.vlgmr.msra.gmra.mrb[0].mxu1 %v143_v54 }
 0x204   :  { %v226_v55 = vpop.f32.mrb[0].mxu1 }
 0x205   :  { %v227_v56 = vadd.f32 %v226_v55, %v137_v51  ;;  %v446_v57 = vpop.f32.mrb[1].mxu1 }
 0x207   :  { %v324_v58 = vclamps-f32 %v227_v56, 0.006082508 }
 0x209   :  { %v232_v59 = vsub.f32 %v227_v56, %v324_v58 }
 0x20b   :  { %480 = vmatmul.mubr.f32.vlgmr.msra.gmra.mrb[2].mxu0 %v232_v59 }
 0x2de   :  { %v299_v60 = vpop.f32.mrb[2].mxu0 }
 0x2df   :  { %v300_v61 = vadd.f32 %v299_v60, %v137_v51  ;;  %v481_v62 = vpop.f32.mrb[3].mxu0 }
 0x2e1   :  { %v325_v63 = vclamps-f32 %v300_v61, 0.006082508 }
 0x2e3   :  { %v305_v0 = vsub.f32 %v300_v61, %v325_v63 }
 0x2e5   :  { %306 = vst [vmem:[#allocation8] sm:$0xff] %v305_v0 }
 0x2e6   :  { %640 = shalt.err (!%p637_p0)
}
 0x2e7   :  { %s641_s25 = scalar_lea.hbm %s774_s3, 128 }
 0x2e8   :  { %p642_p1 = scmp.ne.s32.totalorder %s774_s3, %s641_s25  ;;  %p645_p2 = scmp.lt.u32.totalorder %s641_s25, %s774_s3 }
 0x2ea   :  { %p647_p3 = pnand %p645_p2, %p642_p1 }
 0x2ec   :  { %650 = shalt.err (!%p647_p3)
}
 0x2ed   :  { %316 = dma.vmem_to_hbm [thread:$0]  %s314_s21, 128, %s774_s3, [#allocation4]  }
 0x2ee   :  { %655 = dma.done.wait [#allocation4], 128  }
 0x2ef   :  { %656 = vsyncadd [#allocation4], 4294967168 }
 0x2f0   :  { %320 = vsyncpa [#allocation3], 1 }
 0x2f1   :  { %321 = vsyncpa [#allocation6], 1 }
 0x2f2   :  { %322 = vsyncpa [#allocation4], 1 }

</bundles_post_ra>
